<compile_context>
chip_gen: v6e
topology: v6e:2x2x1
jax: 0.10.0
libtpu: 0.0.40
codegen_flags: <defaults>
</compile_context>

<pallas_src>
import functools

import jax
import jax.numpy as jnp
from jax import lax
from jax.experimental import pallas as pl
from jax.experimental.pallas import tpu as pltpu


def _xca_fused_kernel(temp_ref, x_ref, wqkv_ref, bqkv_ref, wp_ref, bp_ref,
                      o_ref, acc_ref, *, num_heads):
    """Fused QKV projection + XCA core + output projection for one batch.

    temp_ref : SMEM (H,)       f32  per-head temperature
    x_ref    : VMEM (1, N, C)  in   token-major input slab
    wqkv_ref : VMEM (3C, C)    cd   fused QKV weight, torch (out, in) layout
    bqkv_ref : VMEM (3C, 1)    f32  fused QKV bias (column vector)
    wp_ref   : VMEM (C, C)     cd   proj weight, (in, out) layout
    bp_ref   : VMEM (1, C)     f32  proj bias (row vector)
    o_ref    : VMEM (1, N, C)  out  token-major output slab
    acc_ref  : VMEM (C, N)     f32  per-head attn@v scratch (channel-major)
    """
    c = x_ref.shape[2]
    d = c // num_heads                         # keep d a multiple of 8 ideally
    cd = wqkv_ref.dtype                        # MXU operand ("compute") dtype

    # --- fused QKV projection, channel-major result --------------------------
    # (3C, N) = W_qkv @ x^T  (trans-B matmul, single MXU pass, f32 accumulate).
    x = x_ref[0].astype(cd)                                    # (N, C)
    qkv_t = lax.dot_general(
        wqkv_ref[...], x, (((1,), (1,)), ((), ())),
        preferred_element_type=jnp.float32) + bqkv_ref[...]    # (3C, N) f32

    # --- per-head XCA core ----------------------------------------------------
    for h in range(num_heads):
        qh = qkv_t[h * d:(h + 1) * d, :]                       # (d, N) f32
        kh = qkv_t[c + h * d:c + (h + 1) * d, :]
        vh = qkv_t[2 * c + h * d:2 * c + (h + 1) * d, :]

        # torch F.normalize(x, dim=-1): x / max(||x||, 1e-12)
        #   == x * rsqrt(max(||x||^2, 1e-24))      (1e-24 is a normal f32)
        # Sums of squares stay in f32; rsqrt runs on the (otherwise idle) EUP.
        q_inv = lax.rsqrt(jnp.maximum(
            jnp.sum(qh * qh, axis=-1, keepdims=True), 1e-24))  # (d, 1)
        k_inv = lax.rsqrt(jnp.maximum(
            jnp.sum(kh * kh, axis=-1, keepdims=True), 1e-24))  # (d, 1)

        # Cross-covariance logits (d, d): normalize k before the matmul; fold
        # q's normalization + temperature into a (d,1) row scale afterwards.
        kn = (kh * k_inv).astype(cd)
        s = lax.dot_general(
            qh.astype(cd), kn, (((1,), (1,)), ((), ())),
            preferred_element_type=jnp.float32)                # (d, d) f32
        s = s * (q_inv * temp_ref[h])

        # Softmax over the last (channel) axis, f32; reciprocal on the EUP.
        s = jnp.exp(s - jnp.max(s, axis=-1, keepdims=True))
        attn = s * pl.reciprocal(jnp.sum(s, axis=-1, keepdims=True),
                                 approx=True)
        # TODO(synk): attn_drop is identity at inference; training-time
        # stochastic masking (pltpu.prng_*) intentionally omitted.

        # (d, N) head output written into its sublane slice of the scratch.
        acc_ref[h * d:(h + 1) * d, :] = jnp.dot(
            attn.astype(cd), vh.astype(cd),
            preferred_element_type=jnp.float32)

    # --- output projection, token-major ---------------------------------------
    # (N, C) = acc^T @ W_proj(in,out)  (trans-A matmul), bias added in f32.
    y = lax.dot_general(
        acc_ref[...].astype(cd), wp_ref[...], (((0,), (0,)), ((), ())),
        preferred_element_type=jnp.float32) + bp_ref[...]
    # TODO(synk): proj_drop is identity at inference.
    o_ref[0] = y.astype(o_ref.dtype)


@functools.partial(jax.jit, static_argnames=("num_heads", "compute_dtype"))
def _xca_forward_impl(x, w_qkv, b_qkv, w_proj_io, b_proj, temperature, *,
                      num_heads, compute_dtype=None):
    B, N, C = x.shape
    assert C % num_heads == 0
    d = C // num_heads
    dtype = x.dtype
    cd = jnp.dtype(dtype) if compute_dtype is None else jnp.dtype(compute_dtype)

    # MXU operands in the compute dtype; biases / reductions stay f32.
    w_qkv_c = w_qkv.astype(cd)                               # (3C, C) (out, in)
    w_proj_c = w_proj_io.astype(cd)                          # (C, C)  (in, out)
    b_qkv_c = b_qkv.reshape(3 * C, 1).astype(jnp.float32)
    b_proj_c = b_proj.reshape(1, C).astype(jnp.float32)
    temp = temperature.reshape(num_heads).astype(jnp.float32)

    slab = pl.BlockSpec((1, N, C), lambda b: (b, 0, 0))
    resident = lambda shape: pl.BlockSpec(shape, lambda b: (0, 0))

    # TODO(synk): for very large N*C (e.g. v7x's 64 MiB VMEM) this per-batch
    # slab kernel should be split into a two-pass N-tiled variant; demo and
    # typical XCiT/SegFormer shapes fit comfortably.
    kernel = functools.partial(_xca_fused_kernel, num_heads=num_heads)
    return pl.pallas_call(
        kernel,
        out_shape=jax.ShapeDtypeStruct((B, N, C), dtype),
        grid_spec=pltpu.PrefetchScalarGridSpec(
            num_scalar_prefetch=0,
            grid=(B,),
            in_specs=[
                pl.BlockSpec(memory_space=pltpu.MemorySpace.SMEM),  # temperature
                slab,                                   # x  (token-major)
                resident((3 * C, C)),                   # fused QKV weight
                resident((3 * C, 1)),                   # fused QKV bias
                resident((C, C)),                       # proj weight (in, out)
                resident((1, C)),                       # proj bias
            ],
            out_specs=slab,                             # y (token-major)
            scratch_shapes=[pltpu.VMEM((C, N), jnp.float32)],
        ),
        compiler_params=pltpu.CompilerParams(
            dimension_semantics=("parallel",),
            vmem_limit_bytes=64 * 1024 * 1024),
        cost_estimate=pl.CostEstimate(
            flops=B * (2 * N * C * 3 * C
                       + 4 * num_heads * d * d * N
                       + 2 * N * C * C),
            transcendentals=B * num_heads * (d * d + 3 * d),
            bytes_accessed=(dtype.itemsize * 2 * B * N * C
                            + cd.itemsize * 4 * C * C
                            + 4 * (4 * C + num_heads))),
    )(temp, x, w_qkv_c, b_qkv_c, w_proj_c, b_proj_c)


def xca_forward(hidden_states, height, width, *, w_qkv, b_qkv, w_proj_io,
                b_proj, temperature, num_heads, compute_dtype=None):
    """Inference forward of XCA.

    `height`/`width` are accepted for interface parity with the torch module
    but unused by the math.  `w_qkv` is the torch fused qkv weight in its
    native (3C, C) = (out, in) layout (no split needed); `w_proj_io` is the
    torch proj weight transposed once to (in, out) at model-load time.
    `compute_dtype` (e.g. jnp.bfloat16) controls the MXU operand precision;
    accumulation and softmax/normalization stay in f32.
    """
    del height, width
    # TODO(synk): output_attentions=True (returning the per-head d x d
    # attention maps) is not wired up; only the hidden-state output is made.
    return _xca_forward_impl(hidden_states, w_qkv, b_qkv, w_proj_io, b_proj,
                             temperature, num_heads=num_heads,
                             compute_dtype=compute_dtype)


if __name__ == "__main__":
    key = jax.random.PRNGKey(0)
    k_x, k_qkv, k_pw, k_pb, k_t = jax.random.split(key, 5)

    batch, height, width, dim, num_heads = 2, 4, 4, 32, 4
    seq_len = height * width                       # N = H*W tokens

    hidden_states = jax.random.normal(k_x, (batch, seq_len, dim), jnp.float32)

    # torch-layout parameters (nn.Linear weight is (out_features, in_features)).
    qkv_weight = 0.1 * jax.random.normal(k_qkv, (3 * dim, dim), jnp.float32)
    proj_weight = 0.1 * jax.random.normal(k_pw, (dim, dim), jnp.float32)
    proj_bias = 0.1 * jax.random.normal(k_pb, (dim,), jnp.float32)
    temperature = 0.5 + jax.random.uniform(k_t, (num_heads, 1, 1), jnp.float32)

    # One-time (model-load) parameter prep: the fused qkv weight is consumed
    # in its torch (3C, C) layout directly (the kernel computes W @ x^T); only
    # the proj weight is transposed once to (in, out) for the token-major
    # trans-A projection.
    wp_io = proj_weight.T
    qkv_bias = jnp.zeros((3 * dim,), jnp.float32)  # qkv_bias=False (module default)

    out = xca_forward(hidden_states, height, width,
                      w_qkv=qkv_weight, b_qkv=qkv_bias,
                      w_proj_io=wp_io, b_proj=proj_bias,
                      temperature=temperature, num_heads=num_heads)
    jax.block_until_ready(out)

    # ----------------- plain-JAX reference (mirrors the torch forward) -------
    def reference(x):
        B, N, C = x.shape
        d = C // num_heads
        qkv = (x @ qkv_weight.T).reshape(B, N, 3, num_heads, d)
        qkv = qkv.transpose(2, 0, 3, 1, 4)                     # (3, B, h, N, d)
        q, k, v = qkv[0], qkv[1], qkv[2]
        q = jnp.swapaxes(q, -2, -1)                            # (B, h, d, N)
        k = jnp.swapaxes(k, -2, -1)
        v = jnp.swapaxes(v, -2, -1)
        norm = lambda t: t / jnp.maximum(
            jnp.sqrt(jnp.sum(t * t, axis=-1, keepdims=True)), 1e-12)
        q, k = norm(q), norm(k)
        attn = (q @ jnp.swapaxes(k, -2, -1)) * temperature[None]
        attn = jax.nn.softmax(attn, axis=-1)
        y = (attn @ v).transpose(0, 3, 1, 2).reshape(B, N, C)
        return y @ proj_weight.T + proj_bias

    ref = reference(hidden_states)
    assert out.shape == (batch, seq_len, dim)
    max_abs = float(jnp.max(jnp.abs(out - ref)))
    assert jnp.allclose(out, ref, atol=5e-3, rtol=5e-3), f"max_abs_diff={max_abs}"

    # bf16 MXU operands (f32 accumulation / softmax) — looser tolerance.
    out_bf16 = xca_forward(hidden_states, height, width,
                           w_qkv=qkv_weight, b_qkv=qkv_bias,
                           w_proj_io=wp_io, b_proj=proj_bias,
                           temperature=temperature, num_heads=num_heads,
                           compute_dtype=jnp.bfloat16)
    jax.block_until_ready(out_bf16)
    max_abs_bf16 = float(jnp.max(jnp.abs(out_bf16 - ref)))
    assert jnp.allclose(out_bf16, ref, atol=5e-2, rtol=5e-2), \
        f"bf16 max_abs_diff={max_abs_bf16}"

    print("KERNEL_OK")
</pallas_src>

<mosaic_0001>
module attributes {stable_mosaic.version = 11 : i64} {
  func.func @_xca_fused_kernel(%arg0: i32, %arg1: memref<4xf32, #tpu.memory_space<smem>>, %arg2: memref<1x16x32xf32, #tpu.memory_space<vmem>>, %arg3: memref<96x32xf32, #tpu.memory_space<vmem>>, %arg4: memref<96x1xf32, #tpu.memory_space<vmem>>, %arg5: memref<32x32xf32, #tpu.memory_space<vmem>>, %arg6: memref<1x32xf32, #tpu.memory_space<vmem>>, %arg7: memref<1x16x32xf32, #tpu.memory_space<vmem>>, %arg8: memref<32x16xf32, #tpu.memory_space<vmem>>) attributes {dimension_semantics = [#tpu.dimension_semantics<parallel>], iteration_bounds = array<i64: 2>, scalar_prefetch = 0 : i64, scratch_operands = 1 : i64, tpu.core_type = #tpu.core_type<tc>, window_params = [{transform_indices = @transform_0, window_bounds = array<i64: 4>}, {transform_indices = @transform_1, window_bounds = array<i64: 1, 16, 32>}, {pipeline_mode = #tpu.pipeline_mode<synchronous>, transform_indices = @transform_2, window_bounds = array<i64: 96, 32>}, {pipeline_mode = #tpu.pipeline_mode<synchronous>, transform_indices = @transform_3, window_bounds = array<i64: 96, 1>}, {pipeline_mode = #tpu.pipeline_mode<synchronous>, transform_indices = @transform_4, window_bounds = array<i64: 32, 32>}, {pipeline_mode = #tpu.pipeline_mode<synchronous>, transform_indices = @transform_5, window_bounds = array<i64: 1, 32>}, {transform_indices = @transform_6, window_bounds = array<i64: 1, 16, 32>}]} {
    %c0 = arith.constant 0 : index
    %c0_0 = arith.constant 0 : index
    %c0_1 = arith.constant 0 : index
    %0 = vector.load %arg2[%c0, %c0_0, %c0_1] : memref<1x16x32xf32, #tpu.memory_space<vmem>>, vector<1x16x32xf32>
    %1 = vector.shape_cast %0 : vector<1x16x32xf32> to vector<16x32xf32>
    %c0_2 = arith.constant 0 : index
    %c0_3 = arith.constant 0 : index
    %2 = vector.load %arg3[%c0_2, %c0_3] : memref<96x32xf32, #tpu.memory_space<vmem>>, vector<96x32xf32>
    %cst = arith.constant dense<0.000000e+00> : vector<96x16xf32>
    %3 = tpu.matmul %2, %1, %cst {dimension_numbers = #tpu.dot_dimension_numbers<[1], [1], [0], [0], [0, 0, 1, 0], [], []>} : vector<96x32xf32>, vector<16x32xf32>, vector<96x16xf32> -> vector<96x16xf32>
    %c0_4 = arith.constant 0 : index
    %c0_5 = arith.constant 0 : index
    %4 = vector.load %arg4[%c0_4, %c0_5] : memref<96x1xf32, #tpu.memory_space<vmem>>, vector<96x1xf32>
    %5 = vector.broadcast %4 : vector<96x1xf32> to vector<96x16xf32>
    %6 = arith.addf %3, %5 : vector<96x16xf32>
    %7 = vector.extract_strided_slice %6 {offsets = [0, 0], sizes = [8, 16], strides = [1, 1]} : vector<96x16xf32> to vector<8x16xf32>
    %8 = vector.extract_strided_slice %6 {offsets = [32, 0], sizes = [8, 16], strides = [1, 1]} : vector<96x16xf32> to vector<8x16xf32>
    %9 = vector.extract_strided_slice %6 {offsets = [64, 0], sizes = [8, 16], strides = [1, 1]} : vector<96x16xf32> to vector<8x16xf32>
    %10 = arith.mulf %7, %7 : vector<8x16xf32>
    %cst_6 = arith.constant dense<0.000000e+00> : vector<8xf32>
    %11 = vector.multi_reduction <add>, %10, %cst_6 [1] : vector<8x16xf32> to vector<8xf32>
    %12 = vector.shape_cast %11 : vector<8xf32> to vector<8x1xf32>
    %cst_7 = arith.constant 1.000000e-24 : f32
    %13 = vector.broadcast %cst_7 : f32 to vector<8x1xf32>
    %14 = arith.maximumf %12, %13 : vector<8x1xf32>
    %15 = math.rsqrt %14 : vector<8x1xf32>
    %16 = arith.mulf %8, %8 : vector<8x16xf32>
    %cst_8 = arith.constant dense<0.000000e+00> : vector<8xf32>
    %17 = vector.multi_reduction <add>, %16, %cst_8 [1] : vector<8x16xf32> to vector<8xf32>
    %18 = vector.shape_cast %17 : vector<8xf32> to vector<8x1xf32>
    %cst_9 = arith.constant 1.000000e-24 : f32
    %19 = vector.broadcast %cst_9 : f32 to vector<8x1xf32>
    %20 = arith.maximumf %18, %19 : vector<8x1xf32>
    %21 = math.rsqrt %20 : vector<8x1xf32>
    %22 = vector.broadcast %21 : vector<8x1xf32> to vector<8x16xf32>
    %23 = arith.mulf %8, %22 : vector<8x16xf32>
    %cst_10 = arith.constant dense<0.000000e+00> : vector<8x8xf32>
    %24 = tpu.matmul %7, %23, %cst_10 {dimension_numbers = #tpu.dot_dimension_numbers<[1], [1], [0], [0], [0, 0, 1, 0], [], []>} : vector<8x16xf32>, vector<8x16xf32>, vector<8x8xf32> -> vector<8x8xf32>
    %c0_11 = arith.constant 0 : index
    %25 = memref.load %arg1[%c0_11] : memref<4xf32, #tpu.memory_space<smem>>
    %26 = vector.broadcast %25 : f32 to vector<8x1xf32>
    %27 = arith.mulf %15, %26 : vector<8x1xf32>
    %28 = vector.broadcast %27 : vector<8x1xf32> to vector<8x8xf32>
    %29 = arith.mulf %24, %28 : vector<8x8xf32>
    %cst_12 = arith.constant dense<0xFF800000> : vector<8xf32>
    %30 = vector.multi_reduction <maximumf>, %29, %cst_12 [1] : vector<8x8xf32> to vector<8xf32>
    %31 = vector.shape_cast %30 : vector<8xf32> to vector<8x1xf32>
    %32 = vector.broadcast %31 : vector<8x1xf32> to vector<8x8xf32>
    %33 = arith.subf %29, %32 : vector<8x8xf32>
    %34 = math.exp %33 : vector<8x8xf32>
    %cst_13 = arith.constant dense<0.000000e+00> : vector<8xf32>
    %35 = vector.multi_reduction <add>, %34, %cst_13 [1] : vector<8x8xf32> to vector<8xf32>
    %36 = vector.shape_cast %35 : vector<8xf32> to vector<8x1xf32>
    %37 = tpu.reciprocal %36 {approx = true} : vector<8x1xf32> -> vector<8x1xf32>
    %38 = vector.broadcast %37 : vector<8x1xf32> to vector<8x8xf32>
    %39 = arith.mulf %34, %38 : vector<8x8xf32>
    %cst_14 = arith.constant dense<0.000000e+00> : vector<8x16xf32>
    %40 = tpu.matmul %39, %9, %cst_14 {dimension_numbers = #tpu.dot_dimension_numbers<[1], [0], [0], [1], [0, 0, 1, 1], [], []>} : vector<8x8xf32>, vector<8x16xf32>, vector<8x16xf32> -> vector<8x16xf32>
    %c0_15 = arith.constant 0 : index
    %c0_16 = arith.constant 0 : index
    %41 = vector.load %arg8[%c0_15, %c0_16] : memref<32x16xf32, #tpu.memory_space<vmem>>, vector<8x16xf32>
    tpu.vector_store %arg8[%c0_15, %c0_16], %40 {strides = array<i32>} : memref<32x16xf32, #tpu.memory_space<vmem>>, vector<8x16xf32>,
    %42 = vector.extract_strided_slice %6 {offsets = [8, 0], sizes = [8, 16], strides = [1, 1]} : vector<96x16xf32> to vector<8x16xf32>
    %43 = vector.extract_strided_slice %6 {offsets = [40, 0], sizes = [8, 16], strides = [1, 1]} : vector<96x16xf32> to vector<8x16xf32>
    %44 = vector.extract_strided_slice %6 {offsets = [72, 0], sizes = [8, 16], strides = [1, 1]} : vector<96x16xf32> to vector<8x16xf32>
    %45 = arith.mulf %42, %42 : vector<8x16xf32>
    %cst_17 = arith.constant dense<0.000000e+00> : vector<8xf32>
    %46 = vector.multi_reduction <add>, %45, %cst_17 [1] : vector<8x16xf32> to vector<8xf32>
    %47 = vector.shape_cast %46 : vector<8xf32> to vector<8x1xf32>
    %cst_18 = arith.constant 1.000000e-24 : f32
    %48 = vector.broadcast %cst_18 : f32 to vector<8x1xf32>
    %49 = arith.maximumf %47, %48 : vector<8x1xf32>
    %50 = math.rsqrt %49 : vector<8x1xf32>
    %51 = arith.mulf %43, %43 : vector<8x16xf32>
    %cst_19 = arith.constant dense<0.000000e+00> : vector<8xf32>
    %52 = vector.multi_reduction <add>, %51, %cst_19 [1] : vector<8x16xf32> to vector<8xf32>
    %53 = vector.shape_cast %52 : vector<8xf32> to vector<8x1xf32>
    %cst_20 = arith.constant 1.000000e-24 : f32
    %54 = vector.broadcast %cst_20 : f32 to vector<8x1xf32>
    %55 = arith.maximumf %53, %54 : vector<8x1xf32>
    %56 = math.rsqrt %55 : vector<8x1xf32>
    %57 = vector.broadcast %56 : vector<8x1xf32> to vector<8x16xf32>
    %58 = arith.mulf %43, %57 : vector<8x16xf32>
    %cst_21 = arith.constant dense<0.000000e+00> : vector<8x8xf32>
    %59 = tpu.matmul %42, %58, %cst_21 {dimension_numbers = #tpu.dot_dimension_numbers<[1], [1], [0], [0], [0, 0, 1, 0], [], []>} : vector<8x16xf32>, vector<8x16xf32>, vector<8x8xf32> -> vector<8x8xf32>
    %c1 = arith.constant 1 : index
    %60 = memref.load %arg1[%c1] : memref<4xf32, #tpu.memory_space<smem>>
    %61 = vector.broadcast %60 : f32 to vector<8x1xf32>
    %62 = arith.mulf %50, %61 : vector<8x1xf32>
    %63 = vector.broadcast %62 : vector<8x1xf32> to vector<8x8xf32>
    %64 = arith.mulf %59, %63 : vector<8x8xf32>
    %cst_22 = arith.constant dense<0xFF800000> : vector<8xf32>
    %65 = vector.multi_reduction <maximumf>, %64, %cst_22 [1] : vector<8x8xf32> to vector<8xf32>
    %66 = vector.shape_cast %65 : vector<8xf32> to vector<8x1xf32>
    %67 = vector.broadcast %66 : vector<8x1xf32> to vector<8x8xf32>
    %68 = arith.subf %64, %67 : vector<8x8xf32>
    %69 = math.exp %68 : vector<8x8xf32>
    %cst_23 = arith.constant dense<0.000000e+00> : vector<8xf32>
    %70 = vector.multi_reduction <add>, %69, %cst_23 [1] : vector<8x8xf32> to vector<8xf32>
    %71 = vector.shape_cast %70 : vector<8xf32> to vector<8x1xf32>
    %72 = tpu.reciprocal %71 {approx = true} : vector<8x1xf32> -> vector<8x1xf32>
    %73 = vector.broadcast %72 : vector<8x1xf32> to vector<8x8xf32>
    %74 = arith.mulf %69, %73 : vector<8x8xf32>
    %cst_24 = arith.constant dense<0.000000e+00> : vector<8x16xf32>
    %75 = tpu.matmul %74, %44, %cst_24 {dimension_numbers = #tpu.dot_dimension_numbers<[1], [0], [0], [1], [0, 0, 1, 1], [], []>} : vector<8x8xf32>, vector<8x16xf32>, vector<8x16xf32> -> vector<8x16xf32>
    %c8 = arith.constant 8 : index
    %c0_25 = arith.constant 0 : index
    %76 = vector.load %arg8[%c8, %c0_25] : memref<32x16xf32, #tpu.memory_space<vmem>>, vector<8x16xf32>
    tpu.vector_store %arg8[%c8, %c0_25], %75 {strides = array<i32>} : memref<32x16xf32, #tpu.memory_space<vmem>>, vector<8x16xf32>,
    %77 = vector.extract_strided_slice %6 {offsets = [16, 0], sizes = [8, 16], strides = [1, 1]} : vector<96x16xf32> to vector<8x16xf32>
    %78 = vector.extract_strided_slice %6 {offsets = [48, 0], sizes = [8, 16], strides = [1, 1]} : vector<96x16xf32> to vector<8x16xf32>
    %79 = vector.extract_strided_slice %6 {offsets = [80, 0], sizes = [8, 16], strides = [1, 1]} : vector<96x16xf32> to vector<8x16xf32>
    %80 = arith.mulf %77, %77 : vector<8x16xf32>
    %cst_26 = arith.constant dense<0.000000e+00> : vector<8xf32>
    %81 = vector.multi_reduction <add>, %80, %cst_26 [1] : vector<8x16xf32> to vector<8xf32>
    %82 = vector.shape_cast %81 : vector<8xf32> to vector<8x1xf32>
    %cst_27 = arith.constant 1.000000e-24 : f32
    %83 = vector.broadcast %cst_27 : f32 to vector<8x1xf32>
    %84 = arith.maximumf %82, %83 : vector<8x1xf32>
    %85 = math.rsqrt %84 : vector<8x1xf32>
    %86 = arith.mulf %78, %78 : vector<8x16xf32>
    %cst_28 = arith.constant dense<0.000000e+00> : vector<8xf32>
    %87 = vector.multi_reduction <add>, %86, %cst_28 [1] : vector<8x16xf32> to vector<8xf32>
    %88 = vector.shape_cast %87 : vector<8xf32> to vector<8x1xf32>
    %cst_29 = arith.constant 1.000000e-24 : f32
    %89 = vector.broadcast %cst_29 : f32 to vector<8x1xf32>
    %90 = arith.maximumf %88, %89 : vector<8x1xf32>
    %91 = math.rsqrt %90 : vector<8x1xf32>
    %92 = vector.broadcast %91 : vector<8x1xf32> to vector<8x16xf32>
    %93 = arith.mulf %78, %92 : vector<8x16xf32>
    %cst_30 = arith.constant dense<0.000000e+00> : vector<8x8xf32>
    %94 = tpu.matmul %77, %93, %cst_30 {dimension_numbers = #tpu.dot_dimension_numbers<[1], [1], [0], [0], [0, 0, 1, 0], [], []>} : vector<8x16xf32>, vector<8x16xf32>, vector<8x8xf32> -> vector<8x8xf32>
    %c2 = arith.constant 2 : index
    %95 = memref.load %arg1[%c2] : memref<4xf32, #tpu.memory_space<smem>>
    %96 = vector.broadcast %95 : f32 to vector<8x1xf32>
    %97 = arith.mulf %85, %96 : vector<8x1xf32>
    %98 = vector.broadcast %97 : vector<8x1xf32> to vector<8x8xf32>
    %99 = arith.mulf %94, %98 : vector<8x8xf32>
    %cst_31 = arith.constant dense<0xFF800000> : vector<8xf32>
    %100 = vector.multi_reduction <maximumf>, %99, %cst_31 [1] : vector<8x8xf32> to vector<8xf32>
    %101 = vector.shape_cast %100 : vector<8xf32> to vector<8x1xf32>
    %102 = vector.broadcast %101 : vector<8x1xf32> to vector<8x8xf32>
    %103 = arith.subf %99, %102 : vector<8x8xf32>
    %104 = math.exp %103 : vector<8x8xf32>
    %cst_32 = arith.constant dense<0.000000e+00> : vector<8xf32>
    %105 = vector.multi_reduction <add>, %104, %cst_32 [1] : vector<8x8xf32> to vector<8xf32>
    %106 = vector.shape_cast %105 : vector<8xf32> to vector<8x1xf32>
    %107 = tpu.reciprocal %106 {approx = true} : vector<8x1xf32> -> vector<8x1xf32>
    %108 = vector.broadcast %107 : vector<8x1xf32> to vector<8x8xf32>
    %109 = arith.mulf %104, %108 : vector<8x8xf32>
    %cst_33 = arith.constant dense<0.000000e+00> : vector<8x16xf32>
    %110 = tpu.matmul %109, %79, %cst_33 {dimension_numbers = #tpu.dot_dimension_numbers<[1], [0], [0], [1], [0, 0, 1, 1], [], []>} : vector<8x8xf32>, vector<8x16xf32>, vector<8x16xf32> -> vector<8x16xf32>
    %c16 = arith.constant 16 : index
    %c0_34 = arith.constant 0 : index
    %111 = vector.load %arg8[%c16, %c0_34] : memref<32x16xf32, #tpu.memory_space<vmem>>, vector<8x16xf32>
    tpu.vector_store %arg8[%c16, %c0_34], %110 {strides = array<i32>} : memref<32x16xf32, #tpu.memory_space<vmem>>, vector<8x16xf32>,
    %112 = vector.extract_strided_slice %6 {offsets = [24, 0], sizes = [8, 16], strides = [1, 1]} : vector<96x16xf32> to vector<8x16xf32>
    %113 = vector.extract_strided_slice %6 {offsets = [56, 0], sizes = [8, 16], strides = [1, 1]} : vector<96x16xf32> to vector<8x16xf32>
    %114 = vector.extract_strided_slice %6 {offsets = [88, 0], sizes = [8, 16], strides = [1, 1]} : vector<96x16xf32> to vector<8x16xf32>
    %115 = arith.mulf %112, %112 : vector<8x16xf32>
    %cst_35 = arith.constant dense<0.000000e+00> : vector<8xf32>
    %116 = vector.multi_reduction <add>, %115, %cst_35 [1] : vector<8x16xf32> to vector<8xf32>
    %117 = vector.shape_cast %116 : vector<8xf32> to vector<8x1xf32>
    %cst_36 = arith.constant 1.000000e-24 : f32
    %118 = vector.broadcast %cst_36 : f32 to vector<8x1xf32>
    %119 = arith.maximumf %117, %118 : vector<8x1xf32>
    %120 = math.rsqrt %119 : vector<8x1xf32>
    %121 = arith.mulf %113, %113 : vector<8x16xf32>
    %cst_37 = arith.constant dense<0.000000e+00> : vector<8xf32>
    %122 = vector.multi_reduction <add>, %121, %cst_37 [1] : vector<8x16xf32> to vector<8xf32>
    %123 = vector.shape_cast %122 : vector<8xf32> to vector<8x1xf32>
    %cst_38 = arith.constant 1.000000e-24 : f32
    %124 = vector.broadcast %cst_38 : f32 to vector<8x1xf32>
    %125 = arith.maximumf %123, %124 : vector<8x1xf32>
    %126 = math.rsqrt %125 : vector<8x1xf32>
    %127 = vector.broadcast %126 : vector<8x1xf32> to vector<8x16xf32>
    %128 = arith.mulf %113, %127 : vector<8x16xf32>
    %cst_39 = arith.constant dense<0.000000e+00> : vector<8x8xf32>
    %129 = tpu.matmul %112, %128, %cst_39 {dimension_numbers = #tpu.dot_dimension_numbers<[1], [1], [0], [0], [0, 0, 1, 0], [], []>} : vector<8x16xf32>, vector<8x16xf32>, vector<8x8xf32> -> vector<8x8xf32>
    %c3 = arith.constant 3 : index
    %130 = memref.load %arg1[%c3] : memref<4xf32, #tpu.memory_space<smem>>
    %131 = vector.broadcast %130 : f32 to vector<8x1xf32>
    %132 = arith.mulf %120, %131 : vector<8x1xf32>
    %133 = vector.broadcast %132 : vector<8x1xf32> to vector<8x8xf32>
    %134 = arith.mulf %129, %133 : vector<8x8xf32>
    %cst_40 = arith.constant dense<0xFF800000> : vector<8xf32>
    %135 = vector.multi_reduction <maximumf>, %134, %cst_40 [1] : vector<8x8xf32> to vector<8xf32>
    %136 = vector.shape_cast %135 : vector<8xf32> to vector<8x1xf32>
    %137 = vector.broadcast %136 : vector<8x1xf32> to vector<8x8xf32>
    %138 = arith.subf %134, %137 : vector<8x8xf32>
    %139 = math.exp %138 : vector<8x8xf32>
    %cst_41 = arith.constant dense<0.000000e+00> : vector<8xf32>
    %140 = vector.multi_reduction <add>, %139, %cst_41 [1] : vector<8x8xf32> to vector<8xf32>
    %141 = vector.shape_cast %140 : vector<8xf32> to vector<8x1xf32>
    %142 = tpu.reciprocal %141 {approx = true} : vector<8x1xf32> -> vector<8x1xf32>
    %143 = vector.broadcast %142 : vector<8x1xf32> to vector<8x8xf32>
    %144 = arith.mulf %139, %143 : vector<8x8xf32>
    %cst_42 = arith.constant dense<0.000000e+00> : vector<8x16xf32>
    %145 = tpu.matmul %144, %114, %cst_42 {dimension_numbers = #tpu.dot_dimension_numbers<[1], [0], [0], [1], [0, 0, 1, 1], [], []>} : vector<8x8xf32>, vector<8x16xf32>, vector<8x16xf32> -> vector<8x16xf32>
    %c24 = arith.constant 24 : index
    %c0_43 = arith.constant 0 : index
    %146 = vector.load %arg8[%c24, %c0_43] : memref<32x16xf32, #tpu.memory_space<vmem>>, vector<8x16xf32>
    tpu.vector_store %arg8[%c24, %c0_43], %145 {strides = array<i32>} : memref<32x16xf32, #tpu.memory_space<vmem>>, vector<8x16xf32>,
    %c0_44 = arith.constant 0 : index
    %c0_45 = arith.constant 0 : index
    %147 = vector.load %arg8[%c0_44, %c0_45] : memref<32x16xf32, #tpu.memory_space<vmem>>, vector<32x16xf32>
    %c0_46 = arith.constant 0 : index
    %c0_47 = arith.constant 0 : index
    %148 = vector.load %arg5[%c0_46, %c0_47] : memref<32x32xf32, #tpu.memory_space<vmem>>, vector<32x32xf32>
    %cst_48 = arith.constant dense<0.000000e+00> : vector<16x32xf32>
    %149 = tpu.matmul %147, %148, %cst_48 {dimension_numbers = #tpu.dot_dimension_numbers<[0], [0], [1], [1], [0, 1, 1, 1], [], []>} : vector<32x16xf32>, vector<32x32xf32>, vector<16x32xf32> -> vector<16x32xf32>
    %c0_49 = arith.constant 0 : index
    %c0_50 = arith.constant 0 : index
    %150 = vector.load %arg6[%c0_49, %c0_50] : memref<1x32xf32, #tpu.memory_space<vmem>>, vector<1x32xf32>
    %151 = vector.broadcast %150 : vector<1x32xf32> to vector<16x32xf32>
    %152 = arith.addf %149, %151 : vector<16x32xf32>
    %c0_51 = arith.constant 0 : index
    %c0_52 = arith.constant 0 : index
    %c0_53 = arith.constant 0 : index
    %153 = vector.load %arg7[%c0_51, %c0_52, %c0_53] : memref<1x16x32xf32, #tpu.memory_space<vmem>>, vector<1x16x32xf32>
    %154 = vector.shape_cast %153 : vector<1x16x32xf32> to vector<16x32xf32>
    %155 = vector.shape_cast %152 : vector<16x32xf32> to vector<1x16x32xf32>
    tpu.vector_store %arg7[%c0_51, %c0_52, %c0_53], %155 {strides = array<i32>} : memref<1x16x32xf32, #tpu.memory_space<vmem>>, vector<1x16x32xf32>,
    return
  }
  func.func @transform_0(%arg0: i32) -> i32 {
    %c0_i32 = arith.constant 0 : i32
    %c0_i32_0 = arith.constant 0 : i32
    return %c0_i32 : i32
  }
  func.func @transform_1(%arg0: i32) -> (i32, i32, i32) {
    %c0_i32 = arith.constant 0 : i32
    %c0_i32_0 = arith.constant 0 : i32
    %c0_i32_1 = arith.constant 0 : i32
    return %arg0, %c0_i32, %c0_i32_0 : i32, i32, i32
  }
  func.func @transform_2(%arg0: i32) -> (i32, i32) {
    %c0_i32 = arith.constant 0 : i32
    %c0_i32_0 = arith.constant 0 : i32
    %c0_i32_1 = arith.constant 0 : i32
    return %c0_i32, %c0_i32_0 : i32, i32
  }
  func.func @transform_3(%arg0: i32) -> (i32, i32) {
    %c0_i32 = arith.constant 0 : i32
    %c0_i32_0 = arith.constant 0 : i32
    %c0_i32_1 = arith.constant 0 : i32
    return %c0_i32, %c0_i32_0 : i32, i32
  }
  func.func @transform_4(%arg0: i32) -> (i32, i32) {
    %c0_i32 = arith.constant 0 : i32
    %c0_i32_0 = arith.constant 0 : i32
    %c0_i32_1 = arith.constant 0 : i32
    return %c0_i32, %c0_i32_0 : i32, i32
  }
  func.func @transform_5(%arg0: i32) -> (i32, i32) {
    %c0_i32 = arith.constant 0 : i32
    %c0_i32_0 = arith.constant 0 : i32
    %c0_i32_1 = arith.constant 0 : i32
    return %c0_i32, %c0_i32_0 : i32, i32
  }
  func.func @transform_6(%arg0: i32) -> (i32, i32, i32) {
    %c0_i32 = arith.constant 0 : i32
    %c0_i32_0 = arith.constant 0 : i32
    %c0_i32_1 = arith.constant 0 : i32
    return %arg0, %c0_i32, %c0_i32_0 : i32, i32, i32
  }
}

</mosaic_0001>

<bundles_post_ra>
// kernel: _xca_forward_impl.1
= control target key start
LH: loop header
LB: loop body
LE: loop exit
PB: predicated region body
PF: predicated region fallthrough
CT: control target
= control target key end

     0   :  { %11 = vsyncpa [#allocation5], 0  ;;  %s2130_s0 = inlined_call_operand.vmem [shape: f32[4], index: 0, kind: input, shape index: {}]   ;;  %s2131_s1 = inlined_call_operand.vmem [shape: f32[2,16,32], index: 1, kind: input, shape index: {}]   ;;  %s2132_s2 = inlined_call_operand.vmem [shape: f32[96,32], index: 2, kind: input, shape index: {}]   ;;  %s2133_s3 = inlined_call_operand.vmem [shape: f32[96,1], index: 3, kind: input, shape index: {}]   ;;  %s2134_s4 = inlined_call_operand.vmem [shape: f32[32,32], index: 4, kind: input, shape index: {}]   ;;  %s2135_s5 = inlined_call_operand.vmem [shape: f32[1,32], index: 5, kind: input, shape index: {}]   ;;  %s2136_s6 = inlined_call_operand.hbm [shape: f32[2,16,32], index: 6, kind: output, shape index: {}]  }
   0x1   :  { %12 = vsyncpa [#allocation4], 0 }
   0x2   :  { %14 = vsyncpa [#allocation4 + $0x1], 0  ;;  %s1819_s21 = smov 0   ;;  %s1821_s22 = smov 0  }
   0x3   :  { %s1823_s23 = smov 0   ;;  %s1825_s24 = smov 0  }
   0x4 LB: > { %s1840_s25 = sadd.s32 4294967295, %s1775_s24   ;;  %s1450_s26 = sadd.s32 4294967294, %s1775_s24   ;;  %s1775_s24 = sphi %s1825_s24, %s2143_s24   ;;  %s1771_s23 = sphi %s1823_s23, %s2142_s23   ;;  %s1767_s22 = sphi %s1821_s22, %s2141_s22   ;;  %s1763_s21 = sphi %s1819_s21, %s2140_s21  }
   0x5   : > { %s1844_s27 = sadd.s32 1, %s1775_s24   ;;  %s158_s28 = sadd.s32 1, %s1771_s23 }
   0x6   : > { %s155_s29 = ssub.s32 %s1775_s24, %s1844_s27  ;;  %p168_p0 = scmp.ne.s32.totalorder %s1771_s23, %s1767_s22 }
   0x7   : > { %p156_p1 = scmp.eq.s32.totalorder %s155_s29, 0  ;;  %p169_p2 = scmp.eq.s32.totalorder %s1840_s25, 1 }
   0x8   : > { %p174_p3 = scmp.ne.s32.totalorder %s1767_s22, %s1763_s21  ;;  %p175_p4 = scmp.eq.s32.totalorder %s1450_s26, 1 }
   0x9   : > { %s1855_s30 = scalar_select %p156_p1, %s1771_s23, %s158_s28  }
   0xa   : > { %p1857_p5 = por %p169_p2, %p168_p0  ;;  %p1861_p6 = por %p175_p4, %p174_p3 }
   0xb   : > { %p1451_p7 = scmp.ge.s32.totalorder %s1775_s24, 1  ;;  %p182_p8 = scmp.lt.s32.totalorder %s1775_s24, 3 }
   0xc   : > { %p1621_p9 = scmp.eq.s32.totalorder %s1840_s25, 0  ;;  %s195_s12 = sshll.u32 %s2130_s0, 4  ;;  %s196_s12 = int_to_ptr.vmem [resolvable:$true] %s195_s12 }
   0xd   : > { %p1868_p10 = pnand %p1451_p7, %p182_p8  ;;  %s1696_s13 = scalar_lea.vmem %s196_s12, 16 }
   0xe   : > { %p1697_p13 = scmp.ne.s32.totalorder %s196_s12, %s1696_s13  ;;  %p1704_p3 = scmp.lt.s32.totalorder %s196_s12, %s196_s12 }
   0xf   : > { %p1613_p11 = pneg %p1868_p10  ;;  %p1705_p4 = scmp.lt.s32.totalorder %s1696_s13, %s1696_s13 }
  0x11   : > { %p1614_p12 = pnand %p1621_p9, %p1613_p11  ;;  %p1706_p7 = por %p1705_p4, %p1704_p3 }
  0x13   : > { %p1698_p0 = pneg %p1614_p12 }
  0x15   : > { %p1699_p1 = pnand %p1698_p0, %p1697_p13 }
  0x17   : > { %p1700_p2 = pneg %p1699_p1 }
  0x19   : > { %p1707_p8 = pnand %p1706_p7, %p1700_p2 }
  0x1b   : > { %1710 = shalt.err (!%p1707_p8)
}
  0x1c   : > { %s1777_s14 = smov [#allocation3]   ;;  %228 = sbr.rel (%p1868_p10) target bundleno = 2987 (0xbab), region = 44 }
  0x1d   : > { %1616 = dma.vmem_to_smem (!%p1614_p12), %s196_s12, 16, %s1777_s14, [#allocation5]  }
  0x21   : > { %1754 = dma.done.wait (%p1621_p9), [#allocation5], 16  }
  0x22   : > { %1756 = vsyncadd (%p1621_p9), [#allocation5], 4294967280 }
  0x23   : > { %234 = sfence }
  0x24   : > { %p259_p11 = scmp.lt.s32.totalorder %s1840_s25, 1  ;;  %vm350_vm0 = vcmask 261120   ;;  %v266_v0 = vld [vmem:[%s2132_s2] sm:$0xff]  ;;  %v1778_v1 = vmov 0   ;;  %v267_v6 = vld [vmem:[%s2132_s2 + $0x8] sm:$0xff]  ;;  %v268_v7 = vld [vmem:[%s2132_s2 + $0x10] sm:$0xff] }
  0x25   : > { %1538 = vmatprep.mubr.msk.f32.mxu0 %vm350_vm0, %v266_v0  ;;  %1663 = vset.pattern.permute.xlu1 %v1778_v1  ;;  %v278_v2 = vld [vmem:[%s2133_s3] sm:$0xff]  ;;  %v269_v8 = vld [vmem:[%s2132_s2 + $0x18] sm:$0xff]  ;;  %v271_v10 = vld [vmem:[%s2132_s2 + $0x28] sm:$0xff]  ;;  %vm519_vm1 = vcmask 130048   ;;  %v1779_v25 = vmov 0.0   ;;  %vm1780_vm2 = vmmov 0  }
  0x26   : > { %s260_s17 = scalar_select %p259_p11, %s1840_s25, 1  ;;  %1662 = vset.pattern.permute.xlu0 %v1778_v1  ;;  %v282_v3 = vld [vmem:[%s2133_s3 + $0x20] sm:$0xff]  ;;  %292 = vperm.xlu1 %1663, %v278_v2   ;;  %v272_v30 = vld [vmem:[%s2132_s2 + $0x30] sm:$0xff]  ;;  %v273_v31 = vld [vmem:[%s2132_s2 + $0x38] sm:$0xff]  ;;  %vm612_vm3 = vcmask 64512  }
  0x27   : > { %312 = vperm.xlu0 %1662, %v282_v3   ;;  %v270_v9 = vld [vmem:[%s2132_s2 + $0x20] sm:$0xff]  ;;  %1556 = vmatprep.subr.mxu1 %v1779_v25  ;;  %v275_v33 = vld [vmem:[%s2132_s2 + $0x48] sm:$0xff]  ;;  %s608_s14 = sld [smem:[#allocation3]]  ;;  %v284_v59 = vld [vmem:[%s2133_s3 + $0x30] sm:$0xff]  ;;  %s256_s20 = sand.u32 1, %s1767_s22  }
  0x28   : > { %s1496_s28 = sshll.u32 %s260_s17, 4  ;;  %1558 = vmatprep.mubr.msk.f32.mxu1 %vm1780_vm2, %v1779_v25  ;;  %v274_v32 = vld [vmem:[%s2132_s2 + $0x40] sm:$0xff]  ;;  %v283_v43 = vld [vmem:[%s2133_s3 + $0x28] sm:$0xff]  ;;  %v280_v60 = vld [vmem:[%s2133_s3 + $0x10] sm:$0xff]  ;;  %s1482_s26 = sld [smem:[#allocation3 + $0x2]] }
  0x29   : > { %s263_s10 = scalar_lea.vmem %s2131_s1, %s1496_s28  ;;  %v279_v44 = vld [vmem:[%s2133_s3 + $0x8] sm:$0xff]  ;;  %v286_v58 = vld [vmem:[%s2133_s3 + $0x40] sm:$0xff]  ;;  %s1486_s9 = sld [smem:[#allocation3 + $0x3]] }
  0x2a   : > { %v264_v4 = vld [vmem:[%s263_s10] sm:$0xff]  ;;  %v265_v5 = vld [vmem:[%s263_s10 + $0x8] sm:$0xff]  ;;  %s1497_s11 = sshll.u32 %s1840_s25, 8  ;;  %s2090_s15 = scalar_lea.sflag [#allocation4], %s256_s20 }
  0x2b   : > { %1534 = vmatprep.subr.msk.mxu0 %vm350_vm0, %v265_v5  ;;  %s1781_s16 = smov [#allocation6]  }
  0x2c   : > { %1535 = vmatpush3.xpose.msk.msra.mxu0 %vm350_vm0, %v265_v5  ;;  %s1715_s17 = sshll.u32 %s1781_s16, 4  ;;  %s1716_s17 = int_to_ptr.vmem [resolvable:$false] %s1715_s17 }
  0x2d   : > { %1536 = vmatprep.subr.msk.mxu0 %vm350_vm0, %v264_v4  ;;  %v609_v37 = vstv %s608_s14  ;;  %s1478_s14 = sld [smem:[#allocation3 + $0x1]]  ;;  %s1717_s18 = scalar_lea.vmem %s1716_s17, 512 }
  0x30   : > { %1537 = vmatpush3.xpose.msk.msra.mxu0 %vm350_vm0, %v264_v4 }
  0x31   : > { %1591 = vmatprep.subr.mxu0 %v1779_v25 }
  0x33   : > { %1539 = vmatmul.mubr.msk.f32.vlgmr.msra.gmra.mxu0 %vm350_vm0, %v267_v6 }
  0x34   : > { %1541 = vmatprep.mubr.msk.f32.mxu0 %vm350_vm0, %v268_v7 }
  0x37   : > { %1542 = vmatmul.mubr.msk.f32.gmra.mxu0 %vm350_vm0, %v269_v8 }
  0x38   : > { %1544 = vmatprep.mubr.msk.f32.mxu0 %vm350_vm0, %v270_v9 }
  0x3b   : > { %1545 = vmatmul.mubr.msk.f32.gmra.mxu0 %vm350_vm0, %v271_v10 }
  0x3c   : > { %1547 = vmatprep.mubr.msk.f32.mxu0 %vm350_vm0, %v272_v30 }
  0x3f   : > { %1548 = vmatmul.mubr.msk.f32.gmra.mxu0 %vm350_vm0, %v273_v31 }
  0x40   : > { %1550 = vmatprep.mubr.msk.f32.mxu0 %vm350_vm0, %v274_v32 }
  0x43   : > { %1551 = vmatmul.mubr.msk.f32.gmra.mxu0 %vm350_vm0, %v275_v33 }
  0xa1   : > { %v293_v12 = vpop.permute.xlu1 %292 }
  0xa2   : > { %v313_v20 = vpop.permute.xlu0 %312 }
  0xf3   : > { %v1924_v11 = vpop.f32.mrf.mxu0 }
  0xf5   : > { %v459_v13 = vpop.f32.mrf.mxu0 }
  0xf6   : > { %v460_v14 = vadd.f32 %v459_v13, %v293_v12 }
  0xf7   : > { %v1926_v15 = vpop.f32.mrf.mxu0 }
  0xf8   : > { %v518_v16 = vmul.f32 %v460_v14, %v460_v14 }
  0xf9   : > { %v1928_v17 = vpop.f32.mrf.mxu0 }
  0xfa   : > { %v520_v18 = vsel %vm519_vm1, %v518_v16, 0.0 }
  0xfb   : > { %v1546_v19 = vpop.f32.mrf.mxu0  ;;  %521 = vadd.xlane.f32.xlu1 %v520_v18  ;;  %v281_v18 = vld [vmem:[%s2133_s3 + $0x18] sm:$0xff] }
  0xfd   : > { %v479_v21 = vpop.f32.mrf.mxu0 }
  0xfe   : > { %v480_v22 = vadd.f32 %v479_v21, %v313_v20 }
  0xff   : > { %v1977_v61 = vpop.f32.mrf.mxu0 }
 0x100   : > { %v525_v23 = vmul.f32 %v480_v22, %v480_v22 }
 0x101   : > { %v489_v63 = vpop.f32.mrf.mxu0 }
 0x102   : > { %v526_v24 = vsel %vm519_vm1, %v525_v23, 0.0 }
 0x103   : > { %527 = vadd.xlane.f32.xlu0 %v526_v24  ;;  %v1979_v1 = vpop.f32.mrf.mxu0 }
 0x105   : > { %v499_v4 = vpop.f32.mrf.mxu0 }
 0x184   : > { %v522_v34 = vpop.xlane.xlu1 %521 }
 0x185   : > { %v523_v35 = vmax.f32 %v522_v34, 1e-24 }
 0x18c   : > { %v528_v26 = vpop.xlane.xlu0 %527 }
 0x18d   : > { %v529_v27 = vmax.f32 %v528_v26, 1e-24 }
 0x18f   : > { %1664 = vrsqrt.f32 %v529_v27 }
 0x190   : > { %1666 = vrsqrt.f32 %v523_v35 }
 0x19c   : > { %v1665_v28 = vpop.eup %1664 }
 0x19d   : > { %v531_v29 = vmul.f32 %v1665_v28, %v480_v22  ;;  %v1667_v36 = vpop.eup %1666 }
 0x19e   : > { %v610_v38 = vmul.f32 %v1667_v36, %v609_v37 }
 0x19f   : > { %1557 = vmatpush3.xpose.msk.msra.mxu1 %vm519_vm1, %v531_v29  ;;  %v788_v29 = vstv %s1478_s14  ;;  %s2087_s14 = scalar_lea.hbm %s2136_s6, %s1497_s11 }
 0x1a0   : > { %1561 = vmatprep.subr.mxu1 %v1779_v25 }
 0x1a2   : > { %1559 = vmatmul.mubr.msk.f32.vlgmr.msra.gmra.mxu1 %vm519_vm1, %v460_v14 }
 0x1a3   : > { %1563 = vmatprep.mubr.msk.f32.mxu1 %vm1780_vm2, %v1779_v25 }
 0x262   : > { %v604_v39 = vpop.f32.mrf.mxu1 }
 0x263   : > { %v611_v40 = vmul.f32 %v610_v38, %v604_v39 }
 0x264   : > { %v1560_v41 = vpop.f32.mrf.mxu1 }
 0x265   : > { %v613_v42 = vsel %vm612_vm3, %v611_v40, -inf }
 0x266   : > { %614 = vmax.xlane.f32.xlu0 %v613_v42 }
 0x27c   : > { %317 = vperm.xlu0 %1662, %v283_v43   ;;  %v287_v43 = vld [vmem:[%s2133_s3 + $0x48] sm:$0xff] }
 0x280   : > { %297 = vperm.xlu0 %1662, %v279_v44  }
 0x2ef   : > { %v615_v45 = vpop.xlane.xlu0 %614 }
 0x2f0   : > { %v616_v46 = vsub.f32 %v611_v40, %v615_v45 }
 0x2f2   : > { %v617_v47 = vmul.f32 1.442695, %v616_v46 }
 0x2f4   : > { %1668 = vpow2.f32 %v617_v47 }
 0x2f7   : > { %v318_v48 = vpop.permute.xlu0 %317 }
 0x2f8   : > { %v485_v49 = vadd.f32 %v1546_v19, %v318_v48 }
 0x2fa   : > { %v704_v50 = vmul.f32 %v485_v49, %v485_v49 }
 0x2fb   : > { %v298_v51 = vpop.permute.xlu0 %297 }
 0x2fc   : > { %v465_v52 = vadd.f32 %v1924_v11, %v298_v51  ;;  %v705_v53 = vsel %vm519_vm1, %v704_v50, 0.0 }
 0x2fd   : > { %706 = vadd.xlane.f32.xlu1 %v705_v53  ;;  %v276_v53 = vld [vmem:[%s2132_s2 + $0x50] sm:$0xff] }
 0x2fe   : > { %v698_v54 = vmul.f32 %v465_v52, %v465_v52  ;;  %1553 = vmatprep.mubr.msk.f32.mxu0 %vm350_vm0, %v276_v53 }
 0x300   : > { %v699_v55 = vsel %vm519_vm1, %v698_v54, 0.0  ;;  %v277_v54 = vld [vmem:[%s2132_s2 + $0x58] sm:$0xff] }
 0x301   : > { %v1669_v56 = vpop.eup %1668  ;;  %700 = vadd.xlane.f32.xlu0 %v699_v55  ;;  %1554 = vmatmul.mubr.msk.f32.gmra.mxu0 %vm350_vm0, %v277_v54 }
 0x302   : > { %v619_v57 = vsel %vm612_vm3, %v1669_v56, 0.0  ;;  %1593 = vmatprep.mubr.msk.f32.mxu0 %vm1780_vm2, %v1779_v25 }
 0x303   : > { %620 = vadd.xlane.f32.xlu1 %v619_v57 }
 0x314   : > { %332 = vperm.xlu1 %1663, %v286_v58   ;;  %v966_v58 = vstv %s1482_s26  ;;  %s1456_s26 = sshll.u32 %s256_s20, 4 }
 0x317   : > { %322 = vperm.xlu0 %1662, %v284_v59  }
 0x31b   : > { %302 = vperm.xlu0 %1662, %v280_v60  }
 0x386   : > { %v707_v62 = vpop.xlane.xlu1 %706 }
 0x387   : > { %v708_v0 = vmax.f32 %v707_v62, 1e-24 }
 0x389   : > { %1670 = vrsqrt.f32 %v708_v0 }
 0x38a   : > { %v701_v3 = vpop.xlane.xlu0 %700 }
 0x38b   : > { %v702_v26 = vmax.f32 %v701_v3, 1e-24 }
 0x38c   : > { %v621_v2 = vpop.xlane.xlu1 %620 }
 0x38d   : > { %1672 = vrcp.f32 %v621_v2 }
 0x38e   : > { %1674 = vrsqrt.f32 %v702_v26 }
 0x390   : > { %v333_v5 = vpop.permute.xlu1 %332 }
 0x391   : > { %v500_v6 = vadd.f32 %v499_v4, %v333_v5 }
 0x392   : > { %v323_v7 = vpop.permute.xlu0 %322 }
 0x393   : > { %1562 = vmatpush3.msra.mxu1 %v500_v6  ;;  %v490_v31 = vadd.f32 %v489_v63, %v323_v7 }
 0x394   : > { %1566 = vmatprep.subr.mxu1 %v1779_v25 }
 0x395   : > { %v882_v36 = vmul.f32 %v490_v31, %v490_v31 }
 0x396   : > { %v303_v8 = vpop.permute.xlu0 %302  ;;  %v1671_v11 = vpop.eup %1670 }
 0x397   : > { %v1983_v9 = vadd.f32 %v1928_v17, %v303_v8  ;;  %v710_v16 = vmul.f32 %v1671_v11, %v485_v49  ;;  %v285_v17 = vld [vmem:[%s2133_s3 + $0x38] sm:$0xff]  ;;  %v883_v37 = vsel %vm519_vm1, %v882_v36, 0.0 }
 0x399   : > { %v876_v10 = vmul.f32 %v1983_v9, %v1983_v9 }
 0x39a   : > { %v1673_v12 = vpop.eup %1672 }
 0x39b   : > { %v877_v13 = vsel %vm519_vm1, %v876_v10, 0.0  ;;  %v623_v14 = vmul.f32 %v1673_v12, %v1669_v56  ;;  %v1675_v27 = vpop.eup %1674 }
 0x39c   : > { %878 = vadd.xlane.f32.xlu0 %v877_v13  ;;  %v789_v32 = vmul.f32 %v1675_v27, %v788_v29 }
 0x39d   : > { %1564 = vmatmul.mubr.msk.f32.vlgmr.msra.gmra.mxu1 %vm612_vm3, %v623_v14 }
 0x39e   : > { %1567 = vmatpush3.xpose.msk.msra.mxu1 %vm519_vm1, %v710_v16  ;;  %1568 = vmatprep.mubr.msk.f32.mxu1 %vm1780_vm2, %v1779_v25 }
 0x39f   : > { %1571 = vmatprep.subr.mxu1 %v1779_v25 }
 0x3a1   : > { %1569 = vmatmul.mubr.msk.f32.vlgmr.msra.gmra.mxu1 %vm519_vm1, %v465_v52 }
 0x3a2   : > { %1573 = vmatprep.mubr.msk.f32.mxu1 %vm1780_vm2, %v1779_v25 }
 0x3b2   : > { %327 = vperm.xlu0 %1662, %v285_v17  }
 0x3b6   : > { %307 = vperm.xlu0 %1662, %v281_v18  }
 0x3c1   : > { %v1555_v12 = vpop.f32.mrf.mxu0 }
 0x3c3   : > { %v509_v14 = vpop.f32.mrf.mxu0 }
 0x425   : > { %v879_v19 = vpop.xlane.xlu0 %878 }
 0x426   : > { %v880_v55 = vmax.f32 %v879_v19, 1e-24 }
 0x42d   : > { %v2002_v20 = vpop.permute.xlu0 %327 }
 0x42e   : > { %v495_v60 = vadd.f32 %v1977_v61, %v2002_v20  ;;  %v288_v61 = vld [vmem:[%s2133_s3 + $0x50] sm:$0xff] }
 0x430   : > { %v1060_v3 = vmul.f32 %v495_v60, %v495_v60 }
 0x431   : > { %v308_v21 = vpop.permute.xlu0 %307 }
 0x432   : > { %v2005_v22 = vadd.f32 %v1926_v15, %v308_v21  ;;  %v1061_v4 = vsel %vm519_vm1, %v1060_v3, 0.0 }
 0x434   : > { %v1054_v23 = vmul.f32 %v2005_v22, %v2005_v22 }
 0x436   : > { %v1055_v24 = vsel %vm519_vm1, %v1054_v23, 0.0 }
 0x437   : > { %1056 = vadd.xlane.f32.xlu0 %v1055_v24 }
 0x45d   : > { %v693_v28 = vpop.f32.mrf.mxu1 }
 0x45e   : > { %697 = vst.msk [vmem:[#allocation2] sm:$0xff] %vm519_vm1, %v693_v28  ;;  %v1144_v28 = vstv %s1486_s9  ;;  %s258_s9 = scalar_lea.vmem [#allocation6], %s1456_s26 }
 0x45f   : > { %v1565_v30 = vpop.f32.mrf.mxu1  ;;  %s1376_s10 = sshll.u32 %s258_s9, 4  ;;  %s2081_s10 = int_to_ptr.vmem [resolvable:$true] %s1376_s10 }
 0x460   : > { %s1711_s25 = scalar_lea.vmem %s2081_s10, 256  ;;  %p1718_p13 = scmp.lt.s32.totalorder %s2081_s10, %s1716_s17 }
 0x461   : > { %v783_v33 = vpop.f32.mrf.mxu1  ;;  %p1712_p9 = scmp.ne.s32.totalorder %s2081_s10, %s1711_s25  ;;  %p1719_p0 = scmp.lt.s32.totalorder %s1717_s18, %s1711_s25 }
 0x462   : > { %v790_v15 = vmul.f32 %v789_v32, %v783_v33 }
 0x463   : > { %v1570_v34 = vpop.f32.mrf.mxu1  ;;  %p1713_p10 = pnand %p1712_p9, %p1857_p5  ;;  %p1720_p1 = por %p1719_p0, %p1718_p13 }
 0x464   : > { %v791_v35 = vsel %vm612_vm3, %v790_v15, -inf }
 0x465   : > { %792 = vmax.xlane.f32.xlu1 %v791_v35  ;;  %p1714_p12 = pneg %p1713_p10 }
 0x467   : > { %p1721_p2 = pnand %p1720_p1, %p1714_p12 }
 0x469   : > { %884 = vadd.xlane.f32.xlu1 %v883_v37 }
 0x4c0   : > { %v1057_v23 = vpop.xlane.xlu0 %1056 }
 0x4c1   : > { %v1058_v24 = vmax.f32 %v1057_v23, 1e-24 }
 0x4ee   : > { %v793_v38 = vpop.xlane.xlu1 %792 }
 0x4ef   : > { %v794_v39 = vsub.f32 %v790_v15, %v793_v38 }
 0x4f1   : > { %v795_v40 = vmul.f32 1.442695, %v794_v39 }
 0x4f2   : > { %v885_v44 = vpop.xlane.xlu1 %884 }
 0x4f3   : > { %1676 = vpow2.f32 %v795_v40  ;;  %v886_v45 = vmax.f32 %v885_v44, 1e-24  ;;  %v289_v40 = vld [vmem:[%s2133_s3 + $0x58] sm:$0xff] }
 0x4f5   : > { %1678 = vrsqrt.f32 %v886_v45 }
 0x500   : > { %v1677_v41 = vpop.eup %1676 }
 0x501   : > { %v797_v42 = vsel %vm612_vm3, %v1677_v41, 0.0 }
 0x502   : > { %798 = vadd.xlane.f32.xlu1 %v797_v42  ;;  %v1679_v49 = vpop.eup %1678 }
 0x503   : > { %v888_v52 = vmul.f32 %v1679_v49, %v490_v31  ;;  %v1236_v49 = vld [vmem:[%s2134_s4] sm:$0xff] }
 0x513   : > { %337 = vperm.xlu1 %1663, %v287_v43  }
 0x58b   : > { %v799_v46 = vpop.xlane.xlu1 %798 }
 0x58c   : > { %1680 = vrcp.f32 %v799_v46  ;;  %v1239_v46 = vld [vmem:[%s2134_s4 + $0x18] sm:$0xff] }
 0x58d   : > { %1682 = vrsqrt.f32 %v880_v55  ;;  %v1488_v55 = vld [vmem:[%s2135_s5] ss:$0 sm:$0xff] }
 0x58f   : > { %v338_v47 = vpop.permute.xlu1 %337 }
 0x590   : > { %v505_v48 = vadd.f32 %v1979_v1, %v338_v47  ;;  %v1238_v47 = vld [vmem:[%s2134_s4 + $0x10] sm:$0xff] }
 0x592   : > { %1572 = vmatpush3.msra.mxu1 %v505_v48  ;;  %v1237_v48 = vld [vmem:[%s2134_s4 + $0x8] sm:$0xff] }
 0x593   : > { %1576 = vmatprep.subr.mxu1 %v1779_v25 }
 0x599   : > { %v1681_v50 = vpop.eup %1680 }
 0x59a   : > { %v801_v51 = vmul.f32 %v1681_v50, %v1677_v41  ;;  %v1683_v56 = vpop.eup %1682 }
 0x59b   : > { %v967_v62 = vmul.f32 %v1683_v56, %v966_v58 }
 0x59c   : > { %1574 = vmatmul.mubr.msk.f32.vlgmr.msra.gmra.mxu1 %vm612_vm3, %v801_v51 }
 0x59d   : > { %1577 = vmatpush3.xpose.msk.msra.mxu1 %vm519_vm1, %v888_v52  ;;  %1578 = vmatprep.mubr.msk.f32.mxu1 %vm1780_vm2, %v1779_v25 }
 0x59e   : > { %1581 = vmatprep.subr.mxu1 %v1779_v25 }
 0x5a0   : > { %1579 = vmatmul.mubr.msk.f32.vlgmr.msra.gmra.mxu1 %vm519_vm1, %v1983_v9 }
 0x5a1   : > { %1583 = vmatprep.mubr.msk.f32.mxu1 %vm1780_vm2, %v1779_v25 }
 0x65c   : > { %v871_v57 = vpop.f32.mrf.mxu1 }
 0x65d   : > { %875 = vst.msk [vmem:[#allocation2 + $0x8] sm:$0xff] %vm519_vm1, %v871_v57 }
 0x65e   : > { %v1575_v59 = vpop.f32.mrf.mxu1 }
 0x660   : > { %v961_v63 = vpop.f32.mrf.mxu1 }
 0x661   : > { %v968_v0 = vmul.f32 %v967_v62, %v961_v63 }
 0x662   : > { %v1580_v1 = vpop.f32.mrf.mxu1 }
 0x663   : > { %v969_v2 = vsel %vm612_vm3, %v968_v0, -inf }
 0x664   : > { %970 = vmax.xlane.f32.xlu1 %v969_v2 }
 0x668   : > { %1062 = vadd.xlane.f32.xlu1 %v1061_v4 }
 0x6ed   : > { %v971_v5 = vpop.xlane.xlu1 %970 }
 0x6ee   : > { %v972_v6 = vsub.f32 %v968_v0, %v971_v5 }
 0x6f0   : > { %v973_v7 = vmul.f32 1.442695, %v972_v6 }
 0x6f1   : > { %v1063_v10 = vpop.xlane.xlu1 %1062 }
 0x6f2   : > { %1684 = vpow2.f32 %v973_v7  ;;  %v1064_v11 = vmax.f32 %v1063_v10, 1e-24 }
 0x6f4   : > { %1686 = vrsqrt.f32 %v1064_v11 }
 0x6ff   : > { %v1685_v8 = vpop.eup %1684 }
 0x700   : > { %v975_v9 = vsel %vm612_vm3, %v1685_v8, 0.0 }
 0x701   : > { %976 = vadd.xlane.f32.xlu1 %v975_v9  ;;  %v1687_v18 = vpop.eup %1686 }
 0x702   : > { %v1066_v21 = vmul.f32 %v1687_v18, %v495_v60 }
 0x712   : > { %342 = vperm.xlu1 %1663, %v288_v61  }
 0x78a   : > { %v977_v13 = vpop.xlane.xlu1 %976 }
 0x78b   : > { %1688 = vrcp.f32 %v977_v13 }
 0x78c   : > { %1690 = vrsqrt.f32 %v1058_v24 }
 0x78e   : > { %v343_v16 = vpop.permute.xlu1 %342 }
 0x78f   : > { %v510_v17 = vadd.f32 %v509_v14, %v343_v16 }
 0x791   : > { %1582 = vmatpush3.msra.mxu1 %v510_v17 }
 0x792   : > { %1586 = vmatprep.subr.mxu1 %v1779_v25 }
 0x798   : > { %v1689_v19 = vpop.eup %1688 }
 0x799   : > { %v979_v20 = vmul.f32 %v1689_v19, %v1685_v8  ;;  %v1691_v26 = vpop.eup %1690 }
 0x79a   : > { %v1145_v30 = vmul.f32 %v1691_v26, %v1144_v28 }
 0x79b   : > { %1584 = vmatmul.mubr.msk.f32.vlgmr.msra.gmra.mxu1 %vm612_vm3, %v979_v20 }
 0x79c   : > { %1587 = vmatpush3.xpose.msk.msra.mxu1 %vm519_vm1, %v1066_v21  ;;  %1588 = vmatprep.mubr.msk.f32.mxu1 %vm1780_vm2, %v1779_v25  ;;  %v1232_v25 = vld [vmem:[#allocation2] sm:$0xff] }
 0x79d   : > { %1596 = vmatprep.subr.mxu1 %v1239_v46 }
 0x79f   : > { %1589 = vmatmul.mubr.msk.f32.vlgmr.msra.gmra.mxu1 %vm519_vm1, %v2005_v22  ;;  %v1233_v22 = vld [vmem:[#allocation2 + $0x8] sm:$0xff] }
 0x7a0   : > { %1597 = vmatpush3.msra.mxu1 %v1239_v46 }
 0x7a1   : > { %1598 = vmatprep.subr.mxu1 %v1238_v47 }
 0x7a2   : > { %1599 = vmatpush3.msra.mxu1 %v1238_v47 }
 0x7a3   : > { %1600 = vmatprep.subr.mxu1 %v1237_v48 }
 0x7a4   : > { %1601 = vmatpush3.msra.mxu1 %v1237_v48 }
 0x7a5   : > { %1602 = vmatprep.subr.mxu1 %v1236_v49 }
 0x7a6   : > { %1603 = vmatpush3.msra.mxu1 %v1236_v49 }
 0x85b   : > { %v1049_v27 = vpop.f32.mrf.mxu1 }
 0x85c   : > { %1053 = vst.msk [vmem:[#allocation2 + $0x10] sm:$0xff] %vm519_vm1, %v1049_v27 }
 0x85d   : > { %v1585_v29 = vpop.f32.mrf.mxu1 }
 0x85f   : > { %v1139_v31 = vpop.f32.mrf.mxu1 }
 0x860   : > { %v1146_v32 = vmul.f32 %v1145_v30, %v1139_v31 }
 0x861   : > { %v1590_v33 = vpop.f32.mrf.mxu1 }
 0x862   : > { %v1147_v15 = vsel %vm612_vm3, %v1146_v32, -inf }
 0x863   : > { %1148 = vmax.xlane.f32.xlu1 %v1147_v15  ;;  %v1234_v34 = vld [vmem:[#allocation2 + $0x10] sm:$0xff] }
 0x896   : > { %1247 = vxpose.xlu1.b32.start [1/4] (short) (narrow) %v1232_v25, 16 }
 0x89a   : > { %1248 = vxpose.xlu1.b32.cont [2/4] (short) (narrow) %v1233_v22, 16 }
 0x89e   : > { %1249 = vxpose.xlu1.b32.cont [3/4] (short) (narrow) %v1234_v34, 16 }
 0x8ec   : > { %v1149_v35 = vpop.xlane.xlu1 %1148 }
 0x8ed   : > { %v1150_v36 = vsub.f32 %v1146_v32, %v1149_v35 }
 0x8ef   : > { %v1151_v37 = vmul.f32 1.442695, %v1150_v36 }
 0x8f1   : > { %1692 = vpow2.f32 %v1151_v37 }
 0x8fe   : > { %v1693_v38 = vpop.eup %1692 }
 0x8ff   : > { %v1153_v39 = vsel %vm612_vm3, %v1693_v38, 0.0 }
 0x900   : > { %1154 = vadd.xlane.f32.xlu0 %v1153_v39 }
 0x916   : > { %347 = vperm.xlu0 %1662, %v289_v40  }
 0x989   : > { %v1155_v41 = vpop.xlane.xlu0 %1154 }
 0x98a   : > { %1694 = vrcp.f32 %v1155_v41 }
 0x991   : > { %v348_v42 = vpop.permute.xlu0 %347 }
 0x992   : > { %v515_v43 = vadd.f32 %v1555_v12, %v348_v42 }
 0x994   : > { %1592 = vmatpush3.msra.mxu0 %v515_v43 }
 0x997   : > { %v1695_v44 = vpop.eup %1694 }
 0x998   : > { %v1157_v45 = vmul.f32 %v1695_v44, %v1693_v38 }
 0x99a   : > { %1594 = vmatmul.mubr.msk.f32.vlgmr.msra.gmra.mxu0 %vm612_vm3, %v1157_v45 }
 0xa5a   : > { %v1227_v50 = vpop.f32.mrf.mxu0 }
 0xa5b   : > { %1231 = vst.msk [vmem:[#allocation2 + $0x18] sm:$0xff] %vm519_vm1, %v1227_v50 }
 0xa5c   : > { %v1595_v51 = vpop.f32.mrf.mxu0 }
 0xa62   : > { %v1235_v52 = vld [vmem:[#allocation2 + $0x18] sm:$0xff] }
 0xa63   : > { %1250 = vxpose.xlu1.b32.end [4/4] (short) (narrow) %v1235_v52, 16 }
 0xad3   : > { %v1263_v53 = vpop.trf.xlu1 }
 0xad4   : > { %1604 = vmatprep.mubr.msk.f32.mxu1 %vm350_vm0, %v1263_v53 }
 0xad7   : > { %v1264_v54 = vpop.trf.xlu1 }
 0xad8   : > { %1605 = vmatmul.mubr.msk.f32.vlgmr.msra.gmra.mxu1 %vm350_vm0, %v1264_v54 }
 0xb98   : > { %v1606_v56 = vpop.f32.mrf.mxu1 }
 0xb99   : > { %v1357_v57 = vadd.f32 %v1606_v56, %v1488_v55 }
 0xb9a   : > { %v1351_v58 = vpop.f32.mrf.mxu1 }
 0xb9b   : > { %1361 = vst.msk [vmem:[%s258_s9 + $0x8] sm:$0xff] %vm350_vm0, %v1357_v57  ;;  %v1352_v59 = vadd.f32 %v1488_v55, %v1351_v58 }
 0xb9d   : > { %1360 = vst.msk [vmem:[%s258_s9] sm:$0xff] %vm350_vm0, %v1352_v59 }
 0xb9e   : > { %1724 = shalt.err (!%p1721_p2)
}
 0xb9f   : > { %s1725_s19 = scalar_lea.hbm %s2087_s14, 256  ;;  %s1729_s28 = scalar_lea.hbm %s2136_s6, 512 }
 0xba0   : > { %p1726_p3 = scmp.ne.s32.totalorder %s2087_s14, %s1725_s19  ;;  %p1730_p8 = scmp.lt.s32.totalorder %s2087_s14, %s2136_s6 }
 0xba1   : > { %p1731_p11 = scmp.lt.s32.totalorder %s1729_s28, %s1725_s19 }
 0xba2   : > { %p1727_p4 = pnand %p1726_p3, %p1857_p5 }
 0xba3   : > { %p1732_p9 = por %p1731_p11, %p1730_p8 }
 0xba4   : > { %p1728_p7 = pneg %p1727_p4 }
 0xba6   : > { %p1733_p10 = pnand %p1732_p9, %p1728_p7 }
 0xba8   : > { %1736 = shalt.err (!%p1733_p10)
}
 0xba9   : > { %s1782_s11 = smov 128   ;;  %s1783_s12 = smov 8  }
 0xbaa   : > { %1611 = dma.vmem_to_hbm [thread:$0]  (%p1857_p5), %s2081_s10, 256, %s2087_s14, %s2090_s15, %s1782_s11, %s1782_s11, %s1783_s12  }
 0xbab PF: > { %p1623_p12 = scmp.ge.s32.totalorder %s1775_s24, 2  ;;  %s1391_s13 = sand.u32 1, %s1763_s21  }
 0xbac   : > { %s1392_s25 = scalar_lea.sflag [#allocation4], %s1391_s13 }
 0xbad   : > { %p1618_p13 = pnand %p1623_p12, %p1861_p6 }
 0xbaf   : > { %p1619_p0 = pneg %p1618_p13 }
 0xbb1   : > { %1758 = dma.done.wait (%p1619_p0), %s1392_s25, 256  }
 0xbb2   : > { %1760 = vsyncadd (%p1619_p0), %s1392_s25, 4294967040  ;;  %p17_p1 = scmp.ge.s32.totalorder %s1844_s27, 4   ;;  %s2140_s21 = smov %s1767_s22 }
 0xbb3   : > { %s2141_s22 = smov %s1771_s23  ;;  %s2142_s23 = smov %s1855_s30 }
 0xbb4   : > { %s2143_s24 = smov %s1844_s27  ;;  %19 = sbr.rel (!%p17_p1) target bundleno = 4 (0x4), region = 84 }
 0xbb9   :  { %1397 = vsyncpa [#allocation4], 1 }
 0xbba   :  { %1399 = vsyncpa [#allocation4 + $0x1], 1 }
 0xbbb   :  { %1400 = vsyncpa [#allocation5], 1 }
 0xbbc   :  { %1402 = vsyncpa [#allocation5 + $0x1], 1 }

</bundles_post_ra>
